<compile_context>
chip_gen: v5e
topology: v5e:2x2
jax: 0.10.0
libtpu: 0.0.40
codegen_flags: <defaults>
</compile_context>

<pallas_src>
import jax
import jax.numpy as jnp
from jax.experimental import pallas as pl
from jax.experimental.pallas import tpu as pltpu


# ---------------------------------------------------------------------------
# Tile policy: byte-budgeted (row, lane) tiles for a streaming elementwise op
# ---------------------------------------------------------------------------

_LANE = 128
_BLOCK_BUDGET = 2 << 20  # ~2 MiB per block; 2x double-buffered (x, out) ≈ 8 MiB,
                         # safely under v5e's 16 MiB default scoped VMEM and
                         # v7x's 64 MiB physical VMEM.


def _round_down(x: int, m: int) -> int:
    return (x // m) * m


def _round_up(x: int, m: int) -> int:
    return -(-x // m) * m


def _choose_tiles(rows: int, lanes: int, itemsize: int,
                  budget: int = _BLOCK_BUDGET):
    """Pick (row_tile, lane_tile) for a streaming (rows, lanes) elementwise op.

    Row tiles are aligned to the dtype's sublane packing (8 f32 / 16 bf16 /
    32 int8) and lane tiles to 128, unless the full extent is used (which is
    always legal).  Blocks are capped near `budget` bytes.
    """
    sub = 8 * max(1, 4 // itemsize)              # sublane packing per dtype

    # Tiny tensor: one full-extent block — a single grid step, no per-step cost.
    if rows * lanes * itemsize <= budget:
        return rows, lanes

    # Lane tile first (lane-dense stores are the big lever): as wide as the
    # budget allows with a minimal sublane-aligned row count.
    if lanes <= _LANE:
        lt = lanes                               # < 128  ⇒  must be full extent
    else:
        lt = min(_round_down(budget // (sub * itemsize), _LANE), lanes)
        lt = lanes if lt >= lanes else max(lt, _LANE)

    # Row tile: spend the remaining budget on rows (count the 128-lane padding).
    lane_pad = _round_up(max(lt, 1), _LANE)
    tr = max(sub, _round_down(budget // (lane_pad * itemsize), sub))
    if tr >= rows:
        tr = rows                                # full extent (legal even if ragged)
    else:
        tr = min(tr, _round_down(rows, sub))
    return tr, lt


# ---------------------------------------------------------------------------
# Pallas kernel: fused stand-in diffusion model  y = x * scale_row + bias_row
# ---------------------------------------------------------------------------

def _affine_kernel(x_ref, scale_ref, bias_ref, o_ref):
    # x_ref / o_ref : (tr, lt) tile of the (N*C, H*W) slab
    # scale_ref     : (tr, 1) f32  per-row channel scale, broadcast along lanes
    # bias_ref      : (tr, 1) f32  per-row timestep bias,  broadcast along lanes
    acc = x_ref[...].astype(jnp.float32) * scale_ref[...] + bias_ref[...]
    o_ref[...] = acc.astype(o_ref.dtype)


# ---------------------------------------------------------------------------
# Stand-in diffusion model (delegate for the wrapper)
# ---------------------------------------------------------------------------

class StandInDiffusionModel:
    """Deterministic synthetic diffusion model: y[n,c,h,w] = x * scale[c] + t[n]."""

    def __init__(self, channels: int):
        # deterministic parameter init (no checkpoint load)
        self.scale = (jnp.arange(channels, dtype=jnp.float32) + 1.0) * 0.1

    def __call__(self, x: jax.Array, t: jax.Array) -> jax.Array:
        N, C, H, W = x.shape
        R, HW = N * C, H * W
        itemsize = jnp.dtype(x.dtype).itemsize
        tr, lt = _choose_tiles(R, HW, itemsize)

        # Lane-dense 2-D view; per-row affine params are a few KiB, computed
        # once by XLA outside the kernel and shared by every grid step.
        x2 = x.reshape(R, HW)
        scale_col = jnp.tile(self.scale, N).reshape(R, 1)                # scale[c]
        bias_col = jnp.repeat(t.astype(jnp.float32), C).reshape(R, 1)    # t[n]

        # TODO(synk): for toy shapes (total bytes ≪ 1 MiB) a plain XLA fused
        # elementwise op would beat the fixed pallas_call launch overhead; we
        # keep the Pallas path (single full-extent block, one grid step).

        grid = (pl.cdiv(R, tr), pl.cdiv(HW, lt))
        out = pl.pallas_call(
            _affine_kernel,
            out_shape=jax.ShapeDtypeStruct((R, HW), x.dtype),
            grid=grid,
            in_specs=[
                pl.BlockSpec((tr, lt), lambda i, j: (i, j)),
                pl.BlockSpec((tr, 1), lambda i, j: (i, 0)),
                pl.BlockSpec((tr, 1), lambda i, j: (i, 0)),
            ],
            out_specs=pl.BlockSpec((tr, lt), lambda i, j: (i, j)),
            compiler_params=pltpu.CompilerParams(
                dimension_semantics=("parallel", "parallel"),
            ),
            cost_estimate=pl.CostEstimate(
                flops=2 * R * HW,
                transcendentals=0,
                bytes_accessed=2 * R * HW * itemsize + 2 * R * 4,
            ),
        )(x2, scale_col, bias_col)
        return out.reshape(N, C, H, W)


# ---------------------------------------------------------------------------
# IdentityWrapper: pure delegation (matches the PyTorch module exactly)
# ---------------------------------------------------------------------------

class IdentityWrapper:
    """JAX port of sgm IdentityWrapper: pure pass-through, zero extra copies."""

    def __init__(self, diffusion_model, compile_model: bool = False):
        # torch.compile has no semantic effect; jax.jit is the analogue.
        self.diffusion_model = (
            jax.jit(diffusion_model) if compile_model else diffusion_model
        )

    def forward(self, *args, **kwargs):
        # The wrapper adds no compute: return the delegate's output directly
        # (true alias — no identity kernel, no extra HBM read/write).
        return self.diffusion_model(*args, **kwargs)

    __call__ = forward


# ---------------------------------------------------------------------------
# Main
# ---------------------------------------------------------------------------

if __name__ == "__main__":
    key = jax.random.PRNGKey(0)
    kx, kt = jax.random.split(key)

    N, C, H, W = 2, 4, 16, 16
    x = jax.random.normal(kx, (N, C, H, W), dtype=jnp.float32)
    t = jax.random.uniform(kt, (N,), dtype=jnp.float32)

    model = StandInDiffusionModel(channels=C)
    wrapper = IdentityWrapper(model, compile_model=False)

    out = jax.block_until_ready(wrapper(x, t))

    # reference check: wrapper must be an exact pass-through of the model
    ref = x * model.scale.reshape(1, C, 1, 1) + t.reshape(N, 1, 1, 1)
    assert out.shape == (N, C, H, W)
    assert out.dtype == x.dtype
    assert jnp.allclose(out, ref, atol=1e-6), "IdentityWrapper altered the output"

    print("KERNEL_OK")
</pallas_src>

<mosaic_0001>
module attributes {stable_mosaic.version = 11 : i64} {
  func.func @_affine_kernel(%arg0: i32, %arg1: i32, %arg2: memref<8x256xf32, #tpu.memory_space<vmem>>, %arg3: memref<8x1xf32, #tpu.memory_space<vmem>>, %arg4: memref<8x1xf32, #tpu.memory_space<vmem>>, %arg5: memref<8x256xf32, #tpu.memory_space<vmem>>) attributes {dimension_semantics = [#tpu.dimension_semantics<parallel>, #tpu.dimension_semantics<parallel>], iteration_bounds = array<i64: 1, 1>, scalar_prefetch = 0 : i64, scratch_operands = 0 : i64, tpu.core_type = #tpu.core_type<tc>, window_params = [{transform_indices = @transform_0, window_bounds = array<i64: 8, 256>}, {transform_indices = @transform_1, window_bounds = array<i64: 8, 1>}, {transform_indices = @transform_2, window_bounds = array<i64: 8, 1>}, {transform_indices = @transform_3, window_bounds = array<i64: 8, 256>}]} {
    %c0 = arith.constant 0 : index
    %c0_0 = arith.constant 0 : index
    %0 = vector.load %arg2[%c0, %c0_0] : memref<8x256xf32, #tpu.memory_space<vmem>>, vector<8x256xf32>
    %c0_1 = arith.constant 0 : index
    %c0_2 = arith.constant 0 : index
    %1 = vector.load %arg3[%c0_1, %c0_2] : memref<8x1xf32, #tpu.memory_space<vmem>>, vector<8x1xf32>
    %2 = vector.broadcast %1 : vector<8x1xf32> to vector<8x256xf32>
    %3 = arith.mulf %0, %2 : vector<8x256xf32>
    %c0_3 = arith.constant 0 : index
    %c0_4 = arith.constant 0 : index
    %4 = vector.load %arg4[%c0_3, %c0_4] : memref<8x1xf32, #tpu.memory_space<vmem>>, vector<8x1xf32>
    %5 = vector.broadcast %4 : vector<8x1xf32> to vector<8x256xf32>
    %6 = arith.addf %3, %5 : vector<8x256xf32>
    %c0_5 = arith.constant 0 : index
    %c0_6 = arith.constant 0 : index
    %7 = vector.load %arg5[%c0_5, %c0_6] : memref<8x256xf32, #tpu.memory_space<vmem>>, vector<8x256xf32>
    tpu.vector_store %arg5[%c0_5, %c0_6], %6 {strides = array<i32>} : memref<8x256xf32, #tpu.memory_space<vmem>>, vector<8x256xf32>,
    return
  }
  func.func @transform_0(%arg0: i32, %arg1: i32) -> (i32, i32) {
    %c0_i32 = arith.constant 0 : i32
    return %arg0, %arg1 : i32, i32
  }
  func.func @transform_1(%arg0: i32, %arg1: i32) -> (i32, i32) {
    %c0_i32 = arith.constant 0 : i32
    %c0_i32_0 = arith.constant 0 : i32
    return %arg0, %c0_i32 : i32, i32
  }
  func.func @transform_2(%arg0: i32, %arg1: i32) -> (i32, i32) {
    %c0_i32 = arith.constant 0 : i32
    %c0_i32_0 = arith.constant 0 : i32
    return %arg0, %c0_i32 : i32, i32
  }
  func.func @transform_3(%arg0: i32, %arg1: i32) -> (i32, i32) {
    %c0_i32 = arith.constant 0 : i32
    return %arg0, %arg1 : i32, i32
  }
}

</mosaic_0001>

<bundles_post_ra>
// kernel: tpu_custom_call.1
= control target key start
LH: loop header
LB: loop body
LE: loop exit
PB: predicated region body
PF: predicated region fallthrough
CT: control target
= control target key end

     0   :  { %s117_s0 = inlined_call_operand.vmem [shape: f32[8,256], index: 0, kind: input, shape index: {}]   ;;  %s118_s1 = inlined_call_operand.vmem [shape: f32[8,1], index: 1, kind: input, shape index: {}]   ;;  %s119_s2 = inlined_call_operand.vmem [shape: f32[8,1], index: 2, kind: input, shape index: {}]   ;;  %s120_s3 = inlined_call_operand.hbm [shape: f32[8,256], index: 3, kind: output, shape index: {}]  }
   0x1   :  { %v17_v0 = vld [vmem:[%s118_s1] sm:$0xff] }
   0x2   :  { %8 = vsyncpa [#allocation3], 0  ;;  %v80_v1 = vmov 0   ;;  %v25_v2 = vld [vmem:[%s119_s2] sm:$0xff]  ;;  %v16_v5 = vld [vmem:[%s117_s0 + $0x8] sm:$0xff]  ;;  %s81_s1 = smov [#allocation2]  }
   0x3   :  { %53 = vset.pattern.permute.xlu0 %v80_v1  ;;  %v15_v4 = vld [vmem:[%s117_s0] sm:$0xff]  ;;  %s40_s20 = sshll.u32 %s81_s1, 4  ;;  %s42_s23 = sshll.u32 %s120_s3, 4  ;;  %s41_s20 = int_to_ptr.vmem [resolvable:$true] %s40_s20  ;;  %s43_s23 = int_to_ptr.hbm [resolvable:$true] %s42_s23 }
   0x4   :  { %20 = vperm.xlu0 %53, %v17_v0  }
   0xc   :  { %28 = vperm.xlu0 %53, %v25_v2  }
  0x76   :  { %v21_v3 = vpop.permute.xlu0 %20 }
  0x77   :  { %v23_v6 = vmul.f32 %v21_v3, %v15_v4  ;;  %v24_v7 = vmul.f32 %v21_v3, %v16_v5 }
  0x7e   :  { %v29_v8 = vpop.permute.xlu0 %28 }
  0x7f   :  { %v31_v9 = vadd.f32 %v29_v8, %v23_v6  ;;  %v32_v10 = vadd.f32 %v29_v8, %v24_v7 }
  0x81   :  { %33 = vst [vmem:[#allocation2] sm:$0xff] %v31_v9 }
  0x82   :  { %34 = vst [vmem:[#allocation2 + $0x8] sm:$0xff] %v32_v10 }
  0x83   :  { %45 = dma.vmem_to_hbm [thread:$0]  %s41_s20, 256, %s43_s23, [#allocation3]  }
  0x84   :  { %78 = dma.done.wait [#allocation3], 256  }
  0x85   :  { %79 = vsyncadd [#allocation3], 4294967040 }
  0x86   :  { %50 = vsyncpa [#allocation3], 1 }

</bundles_post_ra>
